<compile_context>
chip_gen: v7x
topology: tpu7x:2x2x1
jax: 0.10.0
libtpu: 0.0.40
codegen_flags: <defaults>
</compile_context>

<pallas_src>
import math
import numpy as np
import jax
import jax.numpy as jnp
from jax.experimental import pallas as pl
from jax.experimental.pallas import tpu as pltpu


# ---------------------------------------------------------------------------
# Tiling helpers
# ---------------------------------------------------------------------------
ROWS_PER_TILE = 8                       # one full f32 sublane tile of pixel-group rows per step
VMEM_LIMIT_BYTES = 32 * 1024 * 1024     # safe on v5e(128M phys)/v6e(128M)/v7x(64M phys)


def _ceil_to(a, b):
    return -(-a // b) * b


def _num_core_splits():
    """2-way grid split (per-core partial Gram sums) only on multi-TensorCore chips (v7x);
    on single-TC v5e/v6e the split is pure overhead, so use 1 there."""
    try:
        kind = jax.devices()[0].device_kind.lower()
    except Exception:
        return 1
    return 2 if "v7" in kind else 1


def _pick_group_cols(H, W, target_pix, max_cols):
    """Lane width C: a multiple of both W and 128 so coordinates are per-lane constants.
    Large C amortizes per-grid-step overhead; max_cols caps the VMEM footprint."""
    cmin = W * (128 // math.gcd(W, 128))                       # lcm(W, 128)
    m = max(1, round(target_pix / (ROWS_PER_TILE * cmin)))
    m = min(m, max(1, -(-H * W // (ROWS_PER_TILE * cmin))))    # don't exceed the whole image
    m = min(m, max(1, max_cols // cmin))                       # VMEM cap (v7x: 64 MiB physical)
    return m * cmin


def _base_grid(C, W, fx, fy, cx, cy):
    """(2, 8, C) normalized pixel coordinates of tile 0 (x constant across tiles,
    y needs only a scalar per-tile row shift added in-kernel)."""
    k = C // W
    r = np.arange(ROWS_PER_TILE)[:, None]
    c = np.arange(C)[None, :]
    col = c % W                               # (1, C)
    row = r * k + c // W                      # (8, C)
    xb = np.broadcast_to((col + 0.5 - cx) / fx, (ROWS_PER_TILE, C))
    yb = (row + 0.5 - cy) / fy
    return jnp.asarray(np.stack([xb, yb]).astype(np.float32))


# ---------------------------------------------------------------------------
# Kernel 1: masked Gram matrix A^T A of the 8-point design matrix
# ---------------------------------------------------------------------------
def make_ata_kernel(tiles_per_split, img_rows_per_tile, compute_dtype):
    def ata_kernel(params_ref, base_ref, pix_ref, ata_ref):
        split = pl.program_id(0)
        i = pl.program_id(1)

        @pl.when(i == 0)
        def _():
            ata_ref[...] = jnp.zeros_like(ata_ref)

        inv_fx = params_ref[0]
        inv_fy = params_ref[1]
        t = split * tiles_per_split + i                   # global tile index
        row_shift = (t * img_rows_per_tile).astype(jnp.float32) * inv_fy

        x1 = base_ref[0]                                  # (8, C) normalized grid-1
        y1 = base_ref[1] + row_shift
        x2 = x1 + pix_ref[0] * inv_fx                     # grid-2 = grid-1 + flow (normalized)
        y2 = y1 + pix_ref[1] * inv_fy
        m = pix_ref[2]                                    # binary 0/1 mask
        x1m = x1 * m
        y1m = y1 * m

        # masked 8-point features; m^2 == m, so Cm @ Cm^T == A^T diag(mask) A.
        # Stacked feature-major: row index = a*8 + r (a: feature 0..8, r: sublane row 0..7).
        # NOTE: a scratch-write variant (pltpu.VMEM((72,C)) + per-slab stores) was considered
        # to drop a possible extra concat copy; Mosaic materializes the operand once either
        # way, so the concat is kept for simplicity.
        feats = jnp.concatenate(
            [x2 * x1m, x2 * y1m, x2 * m,
             y2 * x1m, y2 * y1m, y2 * m,
             x1m, y1m, m], axis=0)                        # (72, C) f32
        if compute_dtype != jnp.float32:
            # bf16 operands: ~3x fewer MXU passes than fp32; accumulation stays f32.
            feats = feats.astype(compute_dtype)
        ata_ref[...] += jax.lax.dot_general(
            feats, feats, (((1,), (1,)), ((), ())),
            preferred_element_type=jnp.float32)

    return ata_kernel


def compute_ata(flow, mask, fx, fy, cx, cy, compute_dtype=jnp.bfloat16):
    """flow: (2, H, W), mask: (H, W). Returns the (9, 9) masked Gram matrix A^T A."""
    flow = jnp.asarray(flow, jnp.float32)
    _, H, W = flow.shape
    R = ROWS_PER_TILE
    C = _pick_group_cols(H, W, target_pix=65536, max_cols=8192)
    k = C // W
    img_rows_per_tile = R * k

    tiles_natural = -(-H // img_rows_per_tile)
    num_splits = min(_num_core_splits(), tiles_natural)   # 2 only on v7x (2 TCs/chip)
    Hp = _ceil_to(H, img_rows_per_tile * num_splits)

    maskf = (jnp.asarray(mask) != 0).astype(jnp.float32)
    if Hp != H:
        flow = jnp.pad(flow, ((0, 0), (0, Hp - H), (0, 0)))
        maskf = jnp.pad(maskf, ((0, Hp - H), (0, 0)))
    G = (Hp * W) // C

    pix = jnp.concatenate(
        [flow.reshape(2, G, C), maskf.reshape(1, G, C)], axis=0)   # single DMA stream
    base = _base_grid(C, W, fx, fy, cx, cy)
    params = jnp.array([1.0 / fx, 1.0 / fy], dtype=jnp.float32)

    tiles_total = G // R
    tps = tiles_total // num_splits
    kernel = make_ata_kernel(tps, img_rows_per_tile, compute_dtype)

    partials = pl.pallas_call(
        kernel,
        out_shape=jax.ShapeDtypeStruct((num_splits, 9 * R, 9 * R), jnp.float32),
        grid=(num_splits, tps),
        in_specs=[
            pl.BlockSpec(memory_space=pltpu.MemorySpace.SMEM),          # 1/fx, 1/fy
            pl.BlockSpec((2, R, C), lambda s, i: (0, 0, 0)),            # base grid (const)
            pl.BlockSpec((3, R, C), lambda s, i: (0, s * tps + i, 0)),  # flow_u, flow_v, mask
        ],
        out_specs=pl.BlockSpec((None, 9 * R, 9 * R), lambda s, i: (s, 0, 0)),
        compiler_params=pltpu.CompilerParams(
            dimension_semantics=("parallel", "arbitrary"),
            vmem_limit_bytes=VMEM_LIMIT_BYTES),
    )(params, base, pix)

    # Sum core-partials (no-op when num_splits == 1), then contract the 8 block-diagonal
    # 9x9 Grams (trace over r).
    acc = partials[0] if num_splits == 1 else partials.sum(axis=0)
    G2 = acc.reshape(9, R, 9, R)
    return jnp.trace(G2, axis1=1, axis2=3)


# ---------------------------------------------------------------------------
# Kernel 2: project_to_3d (elementwise unprojection with distortion)
# ---------------------------------------------------------------------------
def make_proj3d_kernel(batch, img_rows_per_tile):
    def proj3d_kernel(params_ref, base_ref, depth_ref, out_ref):
        inv_fy = params_ref[0]
        k1 = params_ref[1]
        k2 = params_ref[2]
        p1 = params_ref[3]
        p2 = params_ref[4]
        t = pl.program_id(0)
        row_shift = (t * img_rows_per_tile).astype(jnp.float32) * inv_fy

        x = base_ref[0]                                   # (8, C)
        y = base_ref[1] + row_shift
        r2 = x * x + y * y
        dist = 1.0 + k1 * r2 + k2 * (r2 * r2)
        two_xy = 2.0 * x * y
        xd = x * dist + p1 * two_xy + p2 * (r2 + 2.0 * x * x)
        yd = y * dist + p2 * two_xy + p1 * (r2 + 2.0 * y * y)

        def write_one(b):
            d = depth_ref[b]                              # (8, C)
            out_ref[b, 0] = xd * d
            out_ref[b, 1] = yd * d
            out_ref[b, 2] = d

        if batch <= 4:
            for b in range(batch):                        # small batch: fully unrolled
                write_one(b)
        else:
            def body(b, carry):                           # large batch: bounded live ranges
                write_one(b)
                return carry
            jax.lax.fori_loop(0, batch, body, 0)

    return proj3d_kernel


def project_to_3d(depth, fx, fy, cx, cy, dist_coeffs, channels_last=False):
    """depth: (B, H, W) float32 -> channel-first (B, 3, H, W) by default (lane-dense, no HBM
    transpose). Pass channels_last=True only at an API boundary that needs (B, H, W, 3)."""
    depth = jnp.asarray(depth, jnp.float32)
    B, H, W = depth.shape
    R = ROWS_PER_TILE
    # cap C so the double-buffered (B, 3, R, C) output block stays around <= 4 MiB
    max_cols = min(8192, max(128, (4 * 1024 * 1024) // (R * 4 * 3 * B)))
    C = _pick_group_cols(H, W, target_pix=65536, max_cols=max_cols)
    k = C // W
    img_rows_per_tile = R * k
    Hp = _ceil_to(H, img_rows_per_tile)
    if Hp != H:
        depth = jnp.pad(depth, ((0, 0), (0, Hp - H), (0, 0)))
    G = (Hp * W) // C

    depth_g = depth.reshape(B, G, C)
    base = _base_grid(C, W, fx, fy, cx, cy)
    k1, k2, p1, p2 = (float(dist_coeffs[i]) for i in range(4))
    params = jnp.array([1.0 / fy, k1, k2, p1, p2], dtype=jnp.float32)

    pts = pl.pallas_call(
        make_proj3d_kernel(B, img_rows_per_tile),
        out_shape=jax.ShapeDtypeStruct((B, 3, G, C), jnp.float32),
        grid=(G // R,),
        in_specs=[
            pl.BlockSpec(memory_space=pltpu.MemorySpace.SMEM),   # 1/fy, k1, k2, p1, p2
            pl.BlockSpec((2, R, C), lambda t: (0, 0, 0)),        # base grid (const)
            pl.BlockSpec((B, R, C), lambda t: (0, t, 0)),        # depth
        ],
        out_specs=pl.BlockSpec((B, 3, R, C), lambda t: (0, 0, t, 0)),
        compiler_params=pltpu.CompilerParams(
            dimension_semantics=("parallel",),
            vmem_limit_bytes=VMEM_LIMIT_BYTES),
    )(params, base, depth_g)

    pts_cf = pts.reshape(B, 3, Hp, W)[:, :, :H, :]        # channel-first, lane-dense
    if channels_last:
        # Layout parity with the PyTorch (B, H, W, 3) output only; this transpose re-reads
        # and re-writes the whole tensor from HBM, so perf consumers keep channel-first.
        return jnp.transpose(pts_cf, (0, 2, 3, 1))
    return pts_cf


# ---------------------------------------------------------------------------
# Plain-JAX references (for correctness checks) and glue
# ---------------------------------------------------------------------------
def ata_reference(flow, mask, fx, fy, cx, cy):
    _, H, W = flow.shape
    yy, xx = jnp.meshgrid(
        jnp.arange(H, dtype=jnp.float32), jnp.arange(W, dtype=jnp.float32), indexing="ij"
    )
    u1 = (xx + 0.5).reshape(-1)
    v1 = (yy + 0.5).reshape(-1)
    u2 = u1 + flow[0].reshape(-1)
    v2 = v1 + flow[1].reshape(-1)
    x1 = (u1 - cx) / fx
    y1 = (v1 - cy) / fy
    x2 = (u2 - cx) / fx
    y2 = (v2 - cy) / fy
    A = jnp.stack(
        [x2 * x1, x2 * y1, x2, y2 * x1, y2 * y1, y2, x1, y1, jnp.ones_like(x1)], axis=-1
    )
    m = (mask.reshape(-1) != 0).astype(jnp.float32)[:, None]
    return (A * m).T @ A


def project_to_3d_reference(depth, fx, fy, cx, cy, dist):
    B, H, W = depth.shape
    k1, k2, p1, p2 = dist
    yy, xx = jnp.meshgrid(
        jnp.arange(H, dtype=jnp.float32), jnp.arange(W, dtype=jnp.float32), indexing="ij"
    )
    x = (xx[None] + 0.5 - cx) / fx
    y = (yy[None] + 0.5 - cy) / fy
    x = jnp.broadcast_to(x, (B, H, W))
    y = jnp.broadcast_to(y, (B, H, W))
    r2 = x ** 2 + y ** 2
    d = 1 + k1 * r2 + k2 * r2 ** 2
    xd = x * d + 2 * p1 * x * y + p2 * (r2 + 2 * x ** 2)
    yd = y * d + 2 * p2 * x * y + p1 * (r2 + 2 * y ** 2)
    return jnp.stack((xd * depth, yd * depth, depth), axis=-1)


def essential_matrix_from_ata(ATA):
    """Mimics the `else:` branch of compute_transform_and_triangulate (plain-JAX glue)."""
    invATA = jnp.linalg.inv(ATA)
    _, V = jnp.linalg.eigh(invATA)
    Vh = V.T
    # S = ||A @ V|| per column == sqrt(diag(V^T A^T A V))
    S = jnp.sqrt(jnp.clip(jnp.diag(Vh @ ATA @ V), 0.0))
    E = Vh[-1].reshape(3, 3)
    return E, S


# ---------------------------------------------------------------------------
if __name__ == "__main__":
    key = jax.random.PRNGKey(0)
    k_flow, k_mask, k_depth = jax.random.split(key, 3)

    # small shapes consistent with the module: 2 images of 16x16
    B, H, W = 2, 16, 16
    # Model.__init__ camera parameters
    f = 0.6 * float(np.sqrt(W * H))
    fx, fy = f, f
    cx, cy = 0.5 * W, 0.5 * H
    camera_dist = jnp.zeros(4, dtype=jnp.float32)  # distortion (k1, k2, p1, p2)

    # forward() inputs: flows[(0,1)] = (flow, mask)
    flow = (2.0 * jax.random.normal(k_flow, (2, H, W))).astype(jnp.float32)
    mask = (jax.random.uniform(k_mask, (H, W)) > 0.3)

    ATA_ref = ata_reference(flow, mask, fx, fy, cx, cy)

    # --- compute_transform_and_triangulate hot path: masked A^T A ---
    # f32 operand path: tight structural/numerical check against the reference
    ATA_f32 = compute_ata(flow, mask, fx, fy, cx, cy, compute_dtype=jnp.float32)
    jax.block_until_ready(ATA_f32)
    np.testing.assert_allclose(np.asarray(ATA_f32), np.asarray(ATA_ref), rtol=1e-4, atol=1e-3)

    # bf16 MXU-operand path (perf default; f32 accumulation): looser tolerance for bf16 rounding
    ATA = compute_ata(flow, mask, fx, fy, cx, cy)
    jax.block_until_ready(ATA)
    scale = float(np.abs(np.asarray(ATA_ref)).max())
    np.testing.assert_allclose(np.asarray(ATA), np.asarray(ATA_ref),
                               rtol=2e-2, atol=2e-2 * scale)

    # glue: essential matrix candidate from the eigen decomposition of inv(A^T A)
    E, S = essential_matrix_from_ata(ATA_f32)
    jax.block_until_ready(E)

    # --- project_to_3d hot path (returnv='points' branch) ---
    depths = jax.random.uniform(k_depth, (B, H, W), dtype=jnp.float32) + 0.5
    depths = depths / depths.mean()  # forward(): depths / depths.mean()
    points_cf = project_to_3d(depths, fx, fy, cx, cy, camera_dist)   # (B, 3, H, W) default
    jax.block_until_ready(points_cf)
    points_ref = project_to_3d_reference(depths, fx, fy, cx, cy, camera_dist)  # (B, H, W, 3)
    np.testing.assert_allclose(
        np.asarray(points_cf),
        np.asarray(jnp.transpose(points_ref, (0, 3, 1, 2))),
        rtol=1e-5, atol=1e-5)

    print("KERNEL_OK")
</pallas_src>

<mosaic_0001>
module attributes {stable_mosaic.version = 11 : i64} {
  func.func @ata_kernel(%arg0: i32, %arg1: i32, %arg2: memref<2xf32, #tpu.memory_space<smem>>, %arg3: memref<2x8x128xf32, #tpu.memory_space<vmem>>, %arg4: memref<3x8x128xf32, #tpu.memory_space<vmem>>, %arg5: memref<1x72x72xf32, #tpu.memory_space<vmem>>) attributes {dimension_semantics = [#tpu.dimension_semantics<parallel>, #tpu.dimension_semantics<arbitrary>], iteration_bounds = array<i64: 1, 1>, scalar_prefetch = 0 : i64, scratch_operands = 0 : i64, tpu.core_type = #tpu.core_type<tc>, window_params = [{transform_indices = @transform_0, window_bounds = array<i64: 2>}, {pipeline_mode = #tpu.pipeline_mode<synchronous>, transform_indices = @transform_1, window_bounds = array<i64: 2, 8, 128>}, {transform_indices = @transform_2, window_bounds = array<i64: 3, 8, 128>}, {transform_indices = @transform_3, window_bounds = array<i64: 1, 72, 72>}]} {
    %c0_i32 = arith.constant 0 : i32
    %0 = arith.cmpi eq, %arg1, %c0_i32 : i32
    %1 = arith.extui %0 : i1 to i32
    %c0_i32_0 = arith.constant 0 : i32
    %2 = arith.cmpi ne, %1, %c0_i32_0 : i32
    scf.if %2 {
      %cst_21 = arith.constant 0.000000e+00 : f32
      %44 = vector.broadcast %cst_21 : f32 to vector<72x72xf32>
      %c0_22 = arith.constant 0 : index
      %c0_23 = arith.constant 0 : index
      %c0_24 = arith.constant 0 : index
      %45 = vector.load %arg5[%c0_22, %c0_23, %c0_24] : memref<1x72x72xf32, #tpu.memory_space<vmem>>, vector<1x72x72xf32>
      %46 = vector.shape_cast %45 : vector<1x72x72xf32> to vector<72x72xf32>
      %47 = vector.shape_cast %44 : vector<72x72xf32> to vector<1x72x72xf32>
      tpu.vector_store %arg5[%c0_22, %c0_23, %c0_24], %47 {strides = array<i32>} : memref<1x72x72xf32, #tpu.memory_space<vmem>>, vector<1x72x72xf32>,
    } else {
    }
    %c0 = arith.constant 0 : index
    %3 = memref.load %arg2[%c0] : memref<2xf32, #tpu.memory_space<smem>>
    %c1 = arith.constant 1 : index
    %4 = memref.load %arg2[%c1] : memref<2xf32, #tpu.memory_space<smem>>
    %c1_i32 = arith.constant 1 : i32
    %5 = arith.muli %arg0, %c1_i32 : i32
    %6 = arith.addi %5, %arg1 : i32
    %c64_i32 = arith.constant 64 : i32
    %7 = arith.muli %6, %c64_i32 : i32
    %8 = arith.sitofp %7 : i32 to f32
    %9 = arith.mulf %8, %4 : f32
    %c0_1 = arith.constant 0 : index
    %c0_2 = arith.constant 0 : index
    %c0_3 = arith.constant 0 : index
    %10 = vector.load %arg3[%c0_1, %c0_2, %c0_3] : memref<2x8x128xf32, #tpu.memory_space<vmem>>, vector<1x8x128xf32>
    %11 = vector.shape_cast %10 : vector<1x8x128xf32> to vector<8x128xf32>
    %c1_4 = arith.constant 1 : index
    %c0_5 = arith.constant 0 : index
    %c0_6 = arith.constant 0 : index
    %12 = vector.load %arg3[%c1_4, %c0_5, %c0_6] : memref<2x8x128xf32, #tpu.memory_space<vmem>>, vector<1x8x128xf32>
    %13 = vector.shape_cast %12 : vector<1x8x128xf32> to vector<8x128xf32>
    %14 = vector.broadcast %9 : f32 to vector<8x128xf32>
    %15 = arith.addf %13, %14 : vector<8x128xf32>
    %c0_7 = arith.constant 0 : index
    %c0_8 = arith.constant 0 : index
    %c0_9 = arith.constant 0 : index
    %16 = vector.load %arg4[%c0_7, %c0_8, %c0_9] : memref<3x8x128xf32, #tpu.memory_space<vmem>>, vector<1x8x128xf32>
    %17 = vector.shape_cast %16 : vector<1x8x128xf32> to vector<8x128xf32>
    %18 = vector.broadcast %3 : f32 to vector<8x128xf32>
    %19 = arith.mulf %17, %18 : vector<8x128xf32>
    %20 = arith.addf %11, %19 : vector<8x128xf32>
    %c1_10 = arith.constant 1 : index
    %c0_11 = arith.constant 0 : index
    %c0_12 = arith.constant 0 : index
    %21 = vector.load %arg4[%c1_10, %c0_11, %c0_12] : memref<3x8x128xf32, #tpu.memory_space<vmem>>, vector<1x8x128xf32>
    %22 = vector.shape_cast %21 : vector<1x8x128xf32> to vector<8x128xf32>
    %23 = vector.broadcast %4 : f32 to vector<8x128xf32>
    %24 = arith.mulf %22, %23 : vector<8x128xf32>
    %25 = arith.addf %15, %24 : vector<8x128xf32>
    %c2 = arith.constant 2 : index
    %c0_13 = arith.constant 0 : index
    %c0_14 = arith.constant 0 : index
    %26 = vector.load %arg4[%c2, %c0_13, %c0_14] : memref<3x8x128xf32, #tpu.memory_space<vmem>>, vector<1x8x128xf32>
    %27 = vector.shape_cast %26 : vector<1x8x128xf32> to vector<8x128xf32>
    %28 = arith.mulf %11, %27 : vector<8x128xf32>
    %29 = arith.mulf %15, %27 : vector<8x128xf32>
    %30 = arith.mulf %20, %28 : vector<8x128xf32>
    %31 = arith.mulf %20, %29 : vector<8x128xf32>
    %32 = arith.mulf %20, %27 : vector<8x128xf32>
    %33 = arith.mulf %25, %28 : vector<8x128xf32>
    %34 = arith.mulf %25, %29 : vector<8x128xf32>
    %35 = arith.mulf %25, %27 : vector<8x128xf32>
    %36 = tpu.concatenate %30, %31, %32, %33, %34, %35, %28, %29, %27 in 0 : vector<8x128xf32>, vector<8x128xf32>, vector<8x128xf32>, vector<8x128xf32>, vector<8x128xf32>, vector<8x128xf32>, vector<8x128xf32>, vector<8x128xf32>, vector<8x128xf32> -> vector<72x128xf32>
    %c0_15 = arith.constant 0 : index
    %c0_16 = arith.constant 0 : index
    %c0_17 = arith.constant 0 : index
    %37 = vector.load %arg5[%c0_15, %c0_16, %c0_17] : memref<1x72x72xf32, #tpu.memory_space<vmem>>, vector<1x72x72xf32>
    %38 = vector.shape_cast %37 : vector<1x72x72xf32> to vector<72x72xf32>
    %cst = arith.constant dense<0.000000e+00> : vector<72x72xf32>
    %39 = tpu.matmul %36, %36, %cst {dimension_numbers = #tpu.dot_dimension_numbers<[1], [1], [0], [0], [0, 0, 1, 0], [], []>} : vector<72x128xf32>, vector<72x128xf32>, vector<72x72xf32> -> vector<72x72xf32>
    %40 = arith.addf %38, %39 : vector<72x72xf32>
    %c0_18 = arith.constant 0 : index
    %c0_19 = arith.constant 0 : index
    %c0_20 = arith.constant 0 : index
    %41 = vector.load %arg5[%c0_18, %c0_19, %c0_20] : memref<1x72x72xf32, #tpu.memory_space<vmem>>, vector<1x72x72xf32>
    %42 = vector.shape_cast %41 : vector<1x72x72xf32> to vector<72x72xf32>
    %43 = vector.shape_cast %40 : vector<72x72xf32> to vector<1x72x72xf32>
    tpu.vector_store %arg5[%c0_18, %c0_19, %c0_20], %43 {strides = array<i32>} : memref<1x72x72xf32, #tpu.memory_space<vmem>>, vector<1x72x72xf32>,
    return
  }
  func.func @transform_0(%arg0: i32, %arg1: i32) -> i32 {
    %c0_i32 = arith.constant 0 : i32
    %c0_i32_0 = arith.constant 0 : i32
    return %c0_i32 : i32
  }
  func.func @transform_1(%arg0: i32, %arg1: i32) -> (i32, i32, i32) {
    %c0_i32 = arith.constant 0 : i32
    %c0_i32_0 = arith.constant 0 : i32
    %c0_i32_1 = arith.constant 0 : i32
    %c0_i32_2 = arith.constant 0 : i32
    return %c0_i32, %c0_i32_0, %c0_i32_1 : i32, i32, i32
  }
  func.func @transform_2(%arg0: i32, %arg1: i32) -> (i32, i32, i32) {
    %c1_i32 = arith.constant 1 : i32
    %0 = arith.muli %arg0, %c1_i32 : i32
    %1 = arith.addi %0, %arg1 : i32
    %c0_i32 = arith.constant 0 : i32
    %c0_i32_0 = arith.constant 0 : i32
    %c0_i32_1 = arith.constant 0 : i32
    return %c0_i32, %1, %c0_i32_0 : i32, i32, i32
  }
  func.func @transform_3(%arg0: i32, %arg1: i32) -> (i32, i32, i32) {
    %c0_i32 = arith.constant 0 : i32
    %c0_i32_0 = arith.constant 0 : i32
    %c0_i32_1 = arith.constant 0 : i32
    return %arg0, %c0_i32, %c0_i32_0 : i32, i32, i32
  }
}

</mosaic_0001>

<bundles_post_ra>
// kernel: tpu_custom_call.1
= control target key start
LH: loop header
LB: loop body
LE: loop exit
PB: predicated region body
PF: predicated region fallthrough
CT: control target
= control target key end

     0   :  { %8 = vsyncpa [#allocation5], 0  ;;  %s575_s0 = inlined_call_operand.hbm [shape: f32[2], index: 0, kind: input, shape index: {}]   ;;  %s576_s1 = inlined_call_operand.hbm [shape: f32[2,8,128], index: 1, kind: input, shape index: {}]   ;;  %s577_s2 = inlined_call_operand.hbm [shape: f32[3,8,128], index: 2, kind: input, shape index: {}]   ;;  %s578_s3 = inlined_call_operand.hbm [shape: f32[1,72,72], index: 3, kind: output, shape index: {}]  }
   0x1   :  { %9 = vsyncpa [#allocation3], 0 }
   0x2   :  { %10 = vsyncpa [#allocation8], 0 }
   0x3   :  { %11 = vsyncpa [#allocation4], 0  ;;  %s354_s14 = scalar_lea.hbm %s575_s0, 16 }
   0x4   :  { %p355_p0 = scmp.ne.s32.totalorder %s575_s0, %s354_s14  ;;  %p358_p1 = scmp.lt.u32.totalorder %s354_s14, %s575_s0 }
   0x6   :  { %p360_p2 = pnand %p358_p1, %p355_p0 }
   0x8   :  { %363 = shalt.err (!%p360_p2)
}
   0x9   :  { %s438_s19 = smov [#allocation2]   ;;  %s439_s22 = smov [#allocation6]  }
   0xa   :  { %19 = dma.hbm_to_smem %s575_s0, 16, %s438_s19, [#allocation5]  }
   0xb   :  { %s25_s23 = sshll.u32 %s439_s22, 4  ;;  %s364_s26 = scalar_lea.hbm %s576_s1, 256  ;;  %s26_s23 = int_to_ptr.vmem [resolvable:$true] %s25_s23 }
   0xc   :  { %p365_p3 = scmp.ne.s32.totalorder %s576_s1, %s364_s26  ;;  %p368_p4 = scmp.lt.u32.totalorder %s364_s26, %s576_s1 }
   0xe   :  { %p370_p5 = pnand %p368_p4, %p365_p3 }
  0x10   :  { %373 = shalt.err (!%p370_p5)
}
  0x11   :  { %s374_s4 = scalar_lea.vmem %s26_s23, 256  ;;  %p379_p7 = scmp.lt.s32.totalorder %s26_s23, %s26_s23 }
  0x12   :  { %p375_p6 = scmp.ne.s32.totalorder %s26_s23, %s374_s4  ;;  %p380_p8 = scmp.lt.s32.totalorder %s374_s4, %s374_s4 }
  0x14   :  { %p381_p9 = por %p380_p8, %p379_p7 }
  0x16   :  { %p382_p10 = pnand %p381_p9, %p375_p6 }
  0x18   :  { %385 = shalt.err (!%p382_p10)
}
  0x19   :  { %s440_s0 = smov 128   ;;  %s441_s5 = smov 8  }
  0x1a   :  { %31 = dma.hbm_to_vmem [thread:$0]  %s576_s1, 256, %s26_s23, [#allocation3], %s440_s0, %s440_s0, %s441_s5  }
  0x1b   :  { %s442_s8 = smov [#allocation7]   ;;  %s386_s12 = scalar_lea.hbm %s577_s2, 384 }
  0x1c   :  { %s40_s9 = sshll.u32 %s442_s8, 4  ;;  %p387_p11 = scmp.ne.s32.totalorder %s577_s2, %s386_s12  ;;  %s41_s9 = int_to_ptr.vmem [resolvable:$true] %s40_s9 }
  0x1d   :  { %p390_p12 = scmp.lt.u32.totalorder %s386_s12, %s577_s2 }
  0x1f   :  { %p392_p13 = pnand %p390_p12, %p387_p11 }
  0x21   :  { %395 = shalt.err (!%p392_p13)
}
  0x22   :  { %s396_s17 = scalar_lea.vmem %s41_s9, 384  ;;  %p401_p1 = scmp.lt.s32.totalorder %s41_s9, %s41_s9 }
  0x23   :  { %p397_p0 = scmp.ne.s32.totalorder %s41_s9, %s396_s17  ;;  %p402_p2 = scmp.lt.s32.totalorder %s396_s17, %s396_s17 }
  0x25   :  { %p403_p3 = por %p402_p2, %p401_p1 }
  0x27   :  { %p404_p4 = pnand %p403_p3, %p397_p0 }
  0x29   :  { %407 = shalt.err (!%p404_p4)
}
  0x2a   :  { %46 = dma.hbm_to_vmem [thread:$0]  %s577_s2, 384, %s41_s9, [#allocation8], %s440_s0, %s440_s0, %s441_s5  }
  0x2b   :  { %430 = dma.done.wait [#allocation5], 16  }
  0x2c   :  { %431 = vsyncadd [#allocation5], 4294967280 }
  0x2d   :  { %432 = dma.done.wait [#allocation3], 256  }
  0x2e   :  { %433 = vsyncadd [#allocation3], 4294967040 }
  0x2f   :  { %434 = dma.done.wait [#allocation8], 384  }
  0x30   :  { %435 = vsyncadd [#allocation8], 4294966912 }
  0x31   :  { %56 = sfence }
  0x32   :  { %s72_s19 = sld [smem:[#allocation2]]  ;;  %s509_s20 = sld [smem:[#allocation2 + $0x1]]  ;;  %v443_v0 = vmov 0.0|0.0   ;;  %vm62_vm0 = vcmask 588800   ;;  %vm444_vm1 = vmmov 0   ;;  %v445_v1 = vmov 0.0  }
  0x33   :  { %323 = vmatprep.subr.bf16.mxu0 %v443_v0  ;;  %335 = vmatprep.subr.bf16.mxu1 %v443_v0  ;;  %63 = vst.msk [vmem:[#allocation9] sm:$0xff] %vm62_vm0, %v445_v1  ;;  %64 = vst.msk [vmem:[#allocation9 + $0x8] sm:$0xff] %vm62_vm0, %v445_v1  ;;  %v78_v2 = vld [vmem:[#allocation6] sm:$0xff]  ;;  %v83_v3 = vld [vmem:[#allocation7] sm:$0xff]  ;;  %s446_s21 = smov [#allocation9]  }
  0x34   :  { %296 = vmatprep.mubr.msk.f32.mxu0 %vm444_vm1, %v445_v1  ;;  %311 = vmatprep.mubr.msk.f32.mxu1 %vm444_vm1, %v445_v1  ;;  %65 = vst.msk [vmem:[#allocation9 + $0x10] sm:$0xff] %vm62_vm0, %v445_v1  ;;  %66 = vst.msk [vmem:[#allocation9 + $0x18] sm:$0xff] %vm62_vm0, %v445_v1  ;;  %v93_v4 = vld [vmem:[#allocation7 + $0x10] sm:$0xff]  ;;  %v80_v5 = vld [vmem:[#allocation6 + $0x8] sm:$0xff]  ;;  %s245_s22 = sshll.u32 %s446_s21, 4  ;;  %s246_s22 = int_to_ptr.vmem [resolvable:$true] %s245_s22 }
  0x35   :  { %67 = vst.msk [vmem:[#allocation9 + $0x20] sm:$0xff] %vm62_vm0, %v445_v1  ;;  %68 = vst.msk [vmem:[#allocation9 + $0x28] sm:$0xff] %vm62_vm0, %v445_v1  ;;  %v88_v7 = vld [vmem:[#allocation7 + $0x8] sm:$0xff]  ;;  %v94_v10 = vmul.f32 %v93_v4, %v78_v2  ;;  %s408_s23 = scalar_lea.vmem %s246_s22, 1152  ;;  %p413_p6 = scmp.lt.s32.totalorder %s246_s22, %s246_s22 }
  0x36   :  { %69 = vst.msk [vmem:[#allocation9 + $0x30] sm:$0xff] %vm62_vm0, %v445_v1  ;;  %70 = vst.msk [vmem:[#allocation9 + $0x38] sm:$0xff] %vm62_vm0, %v445_v1  ;;  %p409_p5 = scmp.ne.s32.totalorder %s246_s22, %s408_s23  ;;  %p414_p7 = scmp.lt.s32.totalorder %s408_s23, %s408_s23 }
  0x37   :  { %71 = vst.msk [vmem:[#allocation9 + $0x40] sm:$0xff] %vm62_vm0, %v445_v1 }
  0x38   :  { %s77_s2 = smul.f32 0.0, %s509_s20  ;;  %v84_v6 = vstv %s72_s19  ;;  %v89_v8 = vstv %s509_s20  ;;  %p415_p8 = por %p414_p7, %p413_p6 }
  0x39   :  { %v85_v9 = vmul.f32 %v84_v6, %v83_v3  ;;  %v90_v14 = vmul.f32 %v89_v8, %v88_v7 }
  0x3a   :  { %v81_v11 = vstv %s77_s2  ;;  %v102_v27 = vld [vmem:[#allocation9] sm:$0xff]  ;;  %v103_v35 = vld [vmem:[#allocation9 + $0x8] sm:$0xff]  ;;  %p416_p9 = pnand %p415_p8, %p409_p5 }
  0x3b   :  { %v82_v12 = vadd.f32 %v81_v11, %v80_v5  ;;  %v86_v13 = vadd.f32 %v85_v9, %v78_v2  ;;  %v104_v43 = vld [vmem:[#allocation9 + $0x10] sm:$0xff]  ;;  %v105_v51 = vld [vmem:[#allocation9 + $0x18] sm:$0xff] }
  0x3c   :  { %v107_v28 = vld [vmem:[#allocation9 + $0x28] sm:$0xff]  ;;  %v106_v59 = vld [vmem:[#allocation9 + $0x20] sm:$0xff] }
  0x3d   :  { %v95_v15 = vmul.f32 %v93_v4, %v82_v12  ;;  %v96_v16 = vmul.f32 %v94_v10, %v86_v13  ;;  %v91_v18 = vadd.f32 %v90_v14, %v82_v12  ;;  %v98_v20 = vmul.f32 %v93_v4, %v86_v13  ;;  %v108_v36 = vld [vmem:[#allocation9 + $0x30] sm:$0xff]  ;;  %v109_v44 = vld [vmem:[#allocation9 + $0x38] sm:$0xff] }
  0x3e   :  { %v110_v52 = vld [vmem:[#allocation9 + $0x40] sm:$0xff] }
  0x3f   :  { %v97_v17 = vmul.f32 %v95_v15, %v86_v13  ;;  %v99_v21 = vmul.f32 %v94_v10, %v91_v18  ;;  %v100_v23 = vmul.f32 %v95_v15, %v91_v18  ;;  %v101_v24 = vmul.f32 %v93_v4, %v91_v18 }
  0x40   :  { %v333_v26 = vpack.c.bf16 %v95_v15, %v94_v10 }
  0x41   :  { %v324_v19 = vpack.c.bf16 %v97_v17, %v96_v16  ;;  %v327_v22 = vpack.c.bf16 %v99_v21, %v98_v20  ;;  %v330_v25 = vpack.c.bf16 %v101_v24, %v100_v23 }
  0x43   :  { %325 = vmatpush3.bf16.xpose.msra.mxu0 %v324_v19  ;;  %340 = vmatpush3.bf16.xpose.msra.mxu1 %v324_v19 }
  0x44   :  { %326 = vmatprep.subr.bf16.mxu0 %v443_v0  ;;  %336 = vmatprep.subr.bf16.mxu1 %v443_v0 }
  0x4b   :  { %328 = vmatpush3.bf16.xpose.msra.mxu0 %v327_v22  ;;  %341 = vmatpush3.bf16.xpose.msra.mxu1 %v327_v22 }
  0x4c   :  { %329 = vmatprep.subr.bf16.mxu0 %v443_v0  ;;  %337 = vmatprep.subr.bf16.mxu1 %v443_v0 }
  0x53   :  { %331 = vmatpush3.bf16.xpose.msra.mxu0 %v330_v25  ;;  %342 = vmatpush3.bf16.xpose.msra.mxu1 %v330_v25 }
  0x54   :  { %332 = vmatprep.subr.bf16.mxu0 %v443_v0  ;;  %338 = vmatprep.subr.bf16.mxu1 %v443_v0 }
  0x5b   :  { %334 = vmatpush3.bf16.xpose.msra.mxu0 %v333_v26  ;;  %343 = vmatpush3.bf16.xpose.msra.mxu1 %v333_v26 }
  0x5c   :  { %294 = vmatprep.subr.mxu0 %v445_v1  ;;  %339 = vmatprep.subr.mxu1 %v445_v1 }
  0x63   :  { %295 = vmatpush3.xpose.msra.mxu0 %v93_v4  ;;  %344 = vmatpush3.xpose.msra.mxu1 %v93_v4 }
  0x66   :  { %297 = vmatmul.mubr.f32.vlgmr.msra.gmra.mrb[0].mxu0 %v96_v16  ;;  %312 = vmatmul.mubr.f32.vlgmr.msra.gmra.mrb[0].mxu1 %v101_v24 }
  0x67   :  { %299 = vmatprep.mubr.msk.f32.mxu0 %vm444_vm1, %v445_v1  ;;  %314 = vmatprep.mubr.msk.f32.mxu1 %vm444_vm1, %v445_v1 }
  0x6a   :  { %300 = vmatmul.mubr.f32.gmra.mrb[2].mxu0 %v97_v17  ;;  %315 = vmatmul.mubr.f32.gmra.mrb[2].mxu1 %v94_v10 }
  0x6b   :  { %302 = vmatprep.mubr.msk.f32.mxu0 %vm444_vm1, %v445_v1  ;;  %317 = vmatprep.mubr.msk.f32.mxu1 %vm444_vm1, %v445_v1 }
  0x6e   :  { %303 = vmatmul.mubr.f32.gmra.mrb[4].mxu0 %v98_v20  ;;  %318 = vmatmul.mubr.f32.gmra.mrb[4].mxu1 %v95_v15 }
  0x6f   :  { %305 = vmatprep.mubr.msk.f32.mxu0 %vm444_vm1, %v445_v1  ;;  %320 = vmatprep.mubr.msk.f32.mxu1 %vm444_vm1, %v445_v1 }
  0x72   :  { %306 = vmatmul.mubr.f32.gmra.mrb[6].mxu0 %v99_v21  ;;  %321 = vmatmul.mubr.f32.gmra.mrb[6].mxu1 %v93_v4 }
  0x73   :  { %308 = vmatprep.mubr.msk.f32.mxu0 %vm444_vm1, %v445_v1 }
  0x76   :  { %309 = vmatmul.mubr.f32.gmra.mrb[8].mxu0 %v100_v23 }
 0x139   :  { %v177_v29 = vpop.f32.mrb[0].mxu0  ;;  %v202_v30 = vpop.f32.mrb[0].mxu1 }
 0x13a   :  { %v221_v31 = vadd.f32 %v177_v29, %v102_v27  ;;  %v298_v32 = vpop.f32.mrb[1].mxu0  ;;  %v226_v33 = vadd.f32 %v202_v30, %v107_v28  ;;  %v313_v34 = vpop.f32.mrb[1].mxu1 }
 0x13c   :  { %231 = vst.msk [vmem:[#allocation9] sm:$0xff] %vm62_vm0, %v221_v31  ;;  %236 = vst.msk [vmem:[#allocation9 + $0x28] sm:$0xff] %vm62_vm0, %v226_v33 }
 0x13d   :  { %v182_v37 = vpop.f32.mrb[2].mxu0  ;;  %v207_v38 = vpop.f32.mrb[2].mxu1 }
 0x13e   :  { %v222_v39 = vadd.f32 %v182_v37, %v103_v35  ;;  %v301_v40 = vpop.f32.mrb[3].mxu0  ;;  %v227_v41 = vadd.f32 %v207_v38, %v108_v36  ;;  %v316_v42 = vpop.f32.mrb[3].mxu1 }
 0x140   :  { %232 = vst.msk [vmem:[#allocation9 + $0x8] sm:$0xff] %vm62_vm0, %v222_v39  ;;  %237 = vst.msk [vmem:[#allocation9 + $0x30] sm:$0xff] %vm62_vm0, %v227_v41 }
 0x141   :  { %v187_v45 = vpop.f32.mrb[4].mxu0  ;;  %v212_v46 = vpop.f32.mrb[4].mxu1 }
 0x142   :  { %v223_v47 = vadd.f32 %v187_v45, %v104_v43  ;;  %v304_v48 = vpop.f32.mrb[5].mxu0  ;;  %v228_v49 = vadd.f32 %v212_v46, %v109_v44  ;;  %v319_v50 = vpop.f32.mrb[5].mxu1 }
 0x144   :  { %233 = vst.msk [vmem:[#allocation9 + $0x10] sm:$0xff] %vm62_vm0, %v223_v47  ;;  %238 = vst.msk [vmem:[#allocation9 + $0x38] sm:$0xff] %vm62_vm0, %v228_v49 }
 0x145   :  { %v192_v53 = vpop.f32.mrb[6].mxu0  ;;  %v217_v54 = vpop.f32.mrb[6].mxu1 }
 0x146   :  { %v224_v55 = vadd.f32 %v192_v53, %v105_v51  ;;  %v307_v56 = vpop.f32.mrb[7].mxu0  ;;  %v229_v57 = vadd.f32 %v217_v54, %v110_v52  ;;  %v322_v58 = vpop.f32.mrb[7].mxu1 }
 0x148   :  { %234 = vst.msk [vmem:[#allocation9 + $0x18] sm:$0xff] %vm62_vm0, %v224_v55  ;;  %239 = vst.msk [vmem:[#allocation9 + $0x40] sm:$0xff] %vm62_vm0, %v229_v57 }
 0x149   :  { %v197_v60 = vpop.f32.mrb[8].mxu0 }
 0x14a   :  { %v225_v61 = vadd.f32 %v197_v60, %v106_v59  ;;  %v310_v62 = vpop.f32.mrb[9].mxu0 }
 0x14c   :  { %235 = vst.msk [vmem:[#allocation9 + $0x20] sm:$0xff] %vm62_vm0, %v225_v61 }
 0x14d   :  { %419 = shalt.err (!%p416_p9)
}
 0x14e   :  { %s420_s26 = scalar_lea.hbm %s578_s3, 1152 }
 0x14f   :  { %p421_p10 = scmp.ne.s32.totalorder %s578_s3, %s420_s26  ;;  %p424_p11 = scmp.lt.u32.totalorder %s420_s26, %s578_s3 }
 0x151   :  { %p426_p12 = pnand %p424_p11, %p421_p10 }
 0x153   :  { %429 = shalt.err (!%p426_p12)
}
 0x154   :  { %251 = dma.vmem_to_hbm [thread:$0]  %s246_s22, 1152, %s578_s3, [#allocation4], %s440_s0, %s440_s0, %s441_s5  }
 0x155   :  { %436 = dma.done.wait [#allocation4], 1152  }
 0x156   :  { %437 = vsyncadd [#allocation4], 4294966144 }
 0x157   :  { %255 = vsyncpa [#allocation3], 1 }
 0x158   :  { %256 = vsyncpa [#allocation8], 1 }
 0x159   :  { %257 = vsyncpa [#allocation4], 1 }
 0x15a   :  { %258 = vsyncpa [#allocation5], 1 }

</bundles_post_ra>
